<compile_context>
chip_gen: v7x
topology: tpu7x:2x2x1
jax: 0.10.0
libtpu: 0.0.40
codegen_flags: <defaults>
</compile_context>

<pallas_src>
import numpy as np
import jax
import jax.numpy as jnp
from jax.experimental import pallas as pl
from jax.experimental.pallas import tpu as pltpu


def bilinear_matrix(out_size: int, in_size: int) -> np.ndarray:
    """Row interpolation matrix reproducing F.interpolate(mode='bilinear',
    align_corners=False) along one spatial axis:  out = M @ in."""
    if out_size == in_size:
        return np.eye(out_size, dtype=np.float32)
    M = np.zeros((out_size, in_size), dtype=np.float32)
    scale = in_size / out_size
    for i in range(out_size):
        src = (i + 0.5) * scale - 0.5
        if src < 0.0:
            src = 0.0
        x0 = int(np.floor(src))
        x0 = min(x0, in_size - 1)
        x1 = min(x0 + 1, in_size - 1)
        lam = src - x0
        M[i, x0] += (1.0 - lam)
        M[i, x1] += lam
    return M


def _blockdiag2(M: np.ndarray) -> np.ndarray:
    """blockdiag(M, M): fuses the 2 flow channels into a single matmul."""
    o, i = M.shape
    out = np.zeros((2 * o, 2 * i), dtype=np.float32)
    out[:o, :i] = M
    out[o:, i:] = M
    return out


def _exact_in_bf16(M: np.ndarray) -> bool:
    rt = np.asarray(jnp.asarray(M, jnp.float32).astype(jnp.bfloat16).astype(jnp.float32))
    return bool(np.array_equal(rt, M.astype(np.float32)))


def _pick_w_tile(W: int) -> int:
    """Largest lane-aligned tile (<= 512) that evenly divides W; otherwise the
    full width (the 'equal to full array dim' BlockSpec rule then applies)."""
    if W % 128 != 0:
        return W
    for cand in (512, 256, 128):
        if W % cand == 0 and W // cand >= 2:
            return cand
    return W


def make_fused_kernel(level_meta, H, epsilon, q, tiled):
    epsilon = float(epsilon)
    q = float(q)

    def kernel(*refs):
        out_ref = refs[-1]                           # (L, TW)
        tgt = refs[0][...].astype(jnp.float32)       # (2H, TW): rows [0,H)=u, [H,2H)=v
        idx = 1
        rows = []
        for meta in level_meta:
            p = refs[idx][...]
            idx += 1
            if meta["use_interp"]:
                A2 = refs[idx][...]                  # (2H, 2h), scale folded in
                Btj = refs[idx + 1][...]             # (w, TW) column tile
                idx += 2
                if tiled:
                    # right-first: nothing recomputed across w-tiles
                    pb = jnp.dot(p, Btj, preferred_element_type=jnp.float32)   # (2h, TW)
                    up = jnp.dot(A2, pb, preferred_element_type=jnp.float32)   # (2H, TW)
                else:
                    ap = jnp.dot(A2, p, preferred_element_type=jnp.float32)    # (2H, w)
                    up = jnp.dot(ap, Btj, preferred_element_type=jnp.float32)  # (2H, W)
            else:
                up = p.astype(jnp.float32)           # already (2H, TW)
            d = up - tgt
            sq = d * d
            sqsum = sq[:H, :] + sq[H:, :]            # u^2 + v^2 (clean sublane slice)
            epe = jnp.sqrt(sqsum)                    # torch.norm(dim=1)
            charb = jnp.exp(q * jnp.log(epe + epsilon))   # (epe + eps)**q, arg > 0
            rows.append(jnp.sum(charb, axis=0, keepdims=True))   # lane-preserving (1, TW)
        stacked = rows[0] if len(rows) == 1 else jnp.concatenate(rows, axis=0)
        out_ref[...] = stacked                       # single lane-dense (L, TW) store

    return kernel


def multi_scale_epe_loss(predicted_flows, target_flow, *, alpha, epsilon, q,
                         gamma, start_level, num_levels):
    del num_levels                                   # stored but unused in the forward
    N, C, H, W = target_flow.shape
    assert C == 2, "optical-flow loss expects 2 channels (u, v)"
    # sublane channel split (sq[:H] + sq[H:]) assumes f32 (8,128) tiling
    assert H % 8 == 0, "H must be a multiple of 8 (sublane-aligned channel split)"

    TW = _pick_w_tile(W)
    num_wt = W // TW
    tiled = num_wt > 1

    active = list(range(start_level, len(predicted_flows)))
    L = len(active)
    assert L >= 1

    tgt_r = target_flow.reshape(N, C * H, W)         # free reshape, native dtype

    inputs = [tgt_r]
    in_specs = [pl.BlockSpec((None, C * H, TW), lambda n, j: (n, 0, j))]
    level_meta = []
    alphas = []

    use_bf16_consts = bool(
        target_flow.dtype == jnp.bfloat16
        and all(predicted_flows[l].dtype == jnp.bfloat16 for l in active))

    def itemsz(a):
        return jnp.dtype(a.dtype).itemsize

    blk_bytes = 2 * (C * H) * TW * itemsz(tgt_r)     # double-buffered target block
    flops = 0

    for l in active:
        pred = predicted_flows[l]
        h, w = pred.shape[-2], pred.shape[-1]
        pred_r = pred.reshape(N, C * h, w)
        inputs.append(pred_r)
        if (h, w) != (H, W):
            in_specs.append(pl.BlockSpec((None, C * h, w), lambda n, j: (n, 0, 0)))
            scale = float(H) / float(h)              # matches PyTorch scale_factor usage
            A2_np = _blockdiag2(bilinear_matrix(H, h)) * np.float32(scale)
            Bt_np = np.ascontiguousarray(bilinear_matrix(W, w).T)
            cdt = jnp.float32
            if use_bf16_consts and _exact_in_bf16(A2_np) and _exact_in_bf16(Bt_np):
                cdt = jnp.bfloat16                   # exact -> no interpolation error
            inputs.append(jnp.asarray(A2_np, dtype=cdt))
            # NOTE: constants (index_map always (0, .)) are never re-DMA'd across
            # steps by the pipeline; default buffering kept for lowering safety.
            in_specs.append(pl.BlockSpec((C * H, C * h), lambda n, j: (0, 0)))
            inputs.append(jnp.asarray(Bt_np, dtype=cdt))
            in_specs.append(pl.BlockSpec((w, TW), lambda n, j: (0, j)))
            level_meta.append({"use_interp": True})
            blk_bytes += 2 * ((C * h) * w * itemsz(pred_r)
                              + (C * H) * (C * h) * jnp.dtype(cdt).itemsize
                              + w * TW * jnp.dtype(cdt).itemsize)
            flops += N * 2 * ((C * h) * w * W + (C * H) * (C * h) * W)
        else:
            in_specs.append(pl.BlockSpec((None, C * H, TW), lambda n, j: (n, 0, j)))
            level_meta.append({"use_interp": False})
            blk_bytes += 2 * (C * H) * TW * itemsz(pred_r)
        alphas.append(float(alpha[l]))
        flops += N * H * W * 8                       # elementwise EPE/Charbonnier pass

    kernel = make_fused_kernel(level_meta, H, epsilon, q, tiled)

    blk_bytes += 2 * L * TW * 4                      # double-buffered output block
    tmp_bytes = 8 * (C * H) * TW * 4                 # f32 temporaries headroom
    vmem_limit = int(min(32 * 1024 * 1024,
                         max(16 * 1024 * 1024, 2 * (blk_bytes + tmp_bytes))))

    bytes_accessed = int(sum(int(np.prod(x.shape)) * itemsz(x) for x in inputs)
                         + N * num_wt * L * TW * 4)
    cost = pl.CostEstimate(flops=int(flops),
                           transcendentals=int(3 * L * N * H * W),
                           bytes_accessed=bytes_accessed)

    out = pl.pallas_call(
        kernel,
        out_shape=jax.ShapeDtypeStruct((N, num_wt, L, TW), jnp.float32),
        grid=(N, num_wt),
        in_specs=in_specs,
        out_specs=pl.BlockSpec((None, None, L, TW), lambda n, j: (n, j, 0, 0)),
        compiler_params=pltpu.CompilerParams(
            dimension_semantics=("parallel", "parallel"),
            vmem_limit_bytes=vmem_limit),
        cost_estimate=cost,
    )(*inputs)

    # JAX epilogue: cross-lane / cross-tile / cross-batch sums, mean + alpha weights.
    level_sums = jnp.sum(out, axis=(0, 1, 3))        # (L,)
    loss = jnp.sum(jnp.asarray(alphas, jnp.float32) * level_sums) / float(N * H * W)

    # The nn.Module registers no nn.Parameters, so the L2 regularization term
    # over self.parameters() is exactly 0.
    regularization_term = 0.0
    return loss + gamma * regularization_term


def _reference_loss(predicted_flows, target_flow, *, alpha, epsilon, q, gamma,
                    start_level):
    """Pure-JAX reference using the same interpolation matrices."""
    H, W = target_flow.shape[-2], target_flow.shape[-1]
    tgt = target_flow.astype(jnp.float32)
    loss = 0.0
    for l in range(start_level, len(predicted_flows)):
        pred = predicted_flows[l].astype(jnp.float32)
        h, w = pred.shape[-2], pred.shape[-1]
        if (h, w) != (H, W):
            scale = H / h
            A = jnp.asarray(bilinear_matrix(H, h))
            Bt = jnp.asarray(bilinear_matrix(W, w).T)
            up = scale * jnp.einsum('Hh,nchw,wW->ncHW', A, pred, Bt)
        else:
            up = pred
        d = up - tgt
        epe = jnp.sqrt(jnp.sum(d * d, axis=1))
        loss = loss + jnp.mean(alpha[l] * (epe + epsilon) ** q)
    return loss + gamma * 0.0


if __name__ == "__main__":
    key = jax.random.PRNGKey(0)
    alpha = (0.32, 0.08, 0.02)
    epsilon = 0.01
    q = 0.4
    gamma = 4e-4
    start_level = 0

    def run_case(case_key, N, H, W, level_hw):
        num_levels = len(level_hw)
        keys = jax.random.split(case_key, num_levels + 1)
        preds = [jax.random.normal(keys[i], (N, 2, h, w), dtype=jnp.float32)
                 for i, (h, w) in enumerate(level_hw)]
        tgt = jax.random.normal(keys[-1], (N, 2, H, W), dtype=jnp.float32)
        got = multi_scale_epe_loss(preds, tgt, alpha=alpha, epsilon=epsilon, q=q,
                                   gamma=gamma, start_level=start_level,
                                   num_levels=num_levels)
        got = jax.block_until_ready(got)
        ref = jax.block_until_ready(_reference_loss(
            preds, tgt, alpha=alpha, epsilon=epsilon, q=q, gamma=gamma,
            start_level=start_level))
        assert np.allclose(np.asarray(got), np.asarray(ref),
                           rtol=1e-4, atol=1e-5), (float(got), float(ref))

    k1, k2 = jax.random.split(key)
    # small square pyramid (single W-tile path)
    run_case(k1, N=2, H=16, W=16, level_hw=[(4, 4), (8, 8), (16, 16)])
    # wide case exercising the lane (W) tile grid axis (TW=128, 2 w-tiles)
    run_case(k2, N=2, H=16, W=256, level_hw=[(4, 64), (8, 128), (16, 256)])
    print("KERNEL_OK")
</pallas_src>

<mosaic_0001>
module attributes {stable_mosaic.version = 11 : i64} {
  func.func @kernel(%arg0: i32, %arg1: i32, %arg2: memref<1x32x16xf32, #tpu.memory_space<vmem>>, %arg3: memref<1x8x4xf32, #tpu.memory_space<vmem>>, %arg4: memref<32x8xf32, #tpu.memory_space<vmem>>, %arg5: memref<4x16xf32, #tpu.memory_space<vmem>>, %arg6: memref<1x16x8xf32, #tpu.memory_space<vmem>>, %arg7: memref<32x16xf32, #tpu.memory_space<vmem>>, %arg8: memref<8x16xf32, #tpu.memory_space<vmem>>, %arg9: memref<1x32x16xf32, #tpu.memory_space<vmem>>, %arg10: memref<1x1x3x16xf32, #tpu.memory_space<vmem>>) attributes {dimension_semantics = [#tpu.dimension_semantics<parallel>, #tpu.dimension_semantics<parallel>], iteration_bounds = array<i64: 2, 1>, scalar_prefetch = 0 : i64, scratch_operands = 0 : i64, tpu.core_type = #tpu.core_type<tc>, window_params = [{transform_indices = @transform_0, window_bounds = array<i64: 1, 32, 16>}, {transform_indices = @transform_1, window_bounds = array<i64: 1, 8, 4>}, {pipeline_mode = #tpu.pipeline_mode<synchronous>, transform_indices = @transform_2, window_bounds = array<i64: 32, 8>}, {transform_indices = @transform_3, window_bounds = array<i64: 4, 16>}, {transform_indices = @transform_4, window_bounds = array<i64: 1, 16, 8>}, {pipeline_mode = #tpu.pipeline_mode<synchronous>, transform_indices = @transform_5, window_bounds = array<i64: 32, 16>}, {transform_indices = @transform_6, window_bounds = array<i64: 8, 16>}, {transform_indices = @transform_7, window_bounds = array<i64: 1, 32, 16>}, {transform_indices = @transform_8, window_bounds = array<i64: 1, 1, 3, 16>}]} {
    %c0 = arith.constant 0 : index
    %c0_0 = arith.constant 0 : index
    %c0_1 = arith.constant 0 : index
    %0 = vector.load %arg2[%c0, %c0_0, %c0_1] : memref<1x32x16xf32, #tpu.memory_space<vmem>>, vector<1x32x16xf32>
    %1 = vector.shape_cast %0 : vector<1x32x16xf32> to vector<32x16xf32>
    %c0_2 = arith.constant 0 : index
    %c0_3 = arith.constant 0 : index
    %c0_4 = arith.constant 0 : index
    %2 = vector.load %arg3[%c0_2, %c0_3, %c0_4] : memref<1x8x4xf32, #tpu.memory_space<vmem>>, vector<1x8x4xf32>
    %3 = vector.shape_cast %2 : vector<1x8x4xf32> to vector<8x4xf32>
    %c0_5 = arith.constant 0 : index
    %c0_6 = arith.constant 0 : index
    %4 = vector.load %arg4[%c0_5, %c0_6] : memref<32x8xf32, #tpu.memory_space<vmem>>, vector<32x8xf32>
    %c0_7 = arith.constant 0 : index
    %c0_8 = arith.constant 0 : index
    %5 = vector.load %arg5[%c0_7, %c0_8] : memref<4x16xf32, #tpu.memory_space<vmem>>, vector<4x16xf32>
    %cst = arith.constant dense<0.000000e+00> : vector<32x4xf32>
    %6 = tpu.matmul %4, %3, %cst {dimension_numbers = #tpu.dot_dimension_numbers<[1], [0], [0], [1], [0, 0, 1, 1], [], []>} : vector<32x8xf32>, vector<8x4xf32>, vector<32x4xf32> -> vector<32x4xf32>
    %cst_9 = arith.constant dense<0.000000e+00> : vector<32x16xf32>
    %7 = tpu.matmul %6, %5, %cst_9 {dimension_numbers = #tpu.dot_dimension_numbers<[1], [0], [0], [1], [0, 0, 1, 1], [], []>} : vector<32x4xf32>, vector<4x16xf32>, vector<32x16xf32> -> vector<32x16xf32>
    %8 = arith.subf %7, %1 : vector<32x16xf32>
    %9 = arith.mulf %8, %8 : vector<32x16xf32>
    %10 = vector.extract_strided_slice %9 {offsets = [0, 0], sizes = [16, 16], strides = [1, 1]} : vector<32x16xf32> to vector<16x16xf32>
    %11 = vector.extract_strided_slice %9 {offsets = [16, 0], sizes = [16, 16], strides = [1, 1]} : vector<32x16xf32> to vector<16x16xf32>
    %12 = arith.addf %10, %11 : vector<16x16xf32>
    %13 = math.sqrt %12 : vector<16x16xf32>
    %cst_10 = arith.constant 0.00999999977 : f32
    %14 = vector.broadcast %cst_10 : f32 to vector<16x16xf32>
    %15 = arith.addf %13, %14 : vector<16x16xf32>
    %16 = math.log %15 : vector<16x16xf32>
    %cst_11 = arith.constant 4.000000e-01 : f32
    %17 = vector.broadcast %cst_11 : f32 to vector<16x16xf32>
    %18 = arith.mulf %17, %16 : vector<16x16xf32>
    %19 = math.exp %18 : vector<16x16xf32>
    %cst_12 = arith.constant dense<0.000000e+00> : vector<16xf32>
    %20 = vector.multi_reduction <add>, %19, %cst_12 [0] : vector<16x16xf32> to vector<16xf32>
    %21 = vector.shape_cast %20 : vector<16xf32> to vector<1x16xf32>
    %c0_13 = arith.constant 0 : index
    %c0_14 = arith.constant 0 : index
    %c0_15 = arith.constant 0 : index
    %22 = vector.load %arg6[%c0_13, %c0_14, %c0_15] : memref<1x16x8xf32, #tpu.memory_space<vmem>>, vector<1x16x8xf32>
    %23 = vector.shape_cast %22 : vector<1x16x8xf32> to vector<16x8xf32>
    %c0_16 = arith.constant 0 : index
    %c0_17 = arith.constant 0 : index
    %24 = vector.load %arg7[%c0_16, %c0_17] : memref<32x16xf32, #tpu.memory_space<vmem>>, vector<32x16xf32>
    %c0_18 = arith.constant 0 : index
    %c0_19 = arith.constant 0 : index
    %25 = vector.load %arg8[%c0_18, %c0_19] : memref<8x16xf32, #tpu.memory_space<vmem>>, vector<8x16xf32>
    %cst_20 = arith.constant dense<0.000000e+00> : vector<32x8xf32>
    %26 = tpu.matmul %24, %23, %cst_20 {dimension_numbers = #tpu.dot_dimension_numbers<[1], [0], [0], [1], [0, 0, 1, 1], [], []>} : vector<32x16xf32>, vector<16x8xf32>, vector<32x8xf32> -> vector<32x8xf32>
    %cst_21 = arith.constant dense<0.000000e+00> : vector<32x16xf32>
    %27 = tpu.matmul %26, %25, %cst_21 {dimension_numbers = #tpu.dot_dimension_numbers<[1], [0], [0], [1], [0, 0, 1, 1], [], []>} : vector<32x8xf32>, vector<8x16xf32>, vector<32x16xf32> -> vector<32x16xf32>
    %28 = arith.subf %27, %1 : vector<32x16xf32>
    %29 = arith.mulf %28, %28 : vector<32x16xf32>
    %30 = vector.extract_strided_slice %29 {offsets = [0, 0], sizes = [16, 16], strides = [1, 1]} : vector<32x16xf32> to vector<16x16xf32>
    %31 = vector.extract_strided_slice %29 {offsets = [16, 0], sizes = [16, 16], strides = [1, 1]} : vector<32x16xf32> to vector<16x16xf32>
    %32 = arith.addf %30, %31 : vector<16x16xf32>
    %33 = math.sqrt %32 : vector<16x16xf32>
    %cst_22 = arith.constant 0.00999999977 : f32
    %34 = vector.broadcast %cst_22 : f32 to vector<16x16xf32>
    %35 = arith.addf %33, %34 : vector<16x16xf32>
    %36 = math.log %35 : vector<16x16xf32>
    %cst_23 = arith.constant 4.000000e-01 : f32
    %37 = vector.broadcast %cst_23 : f32 to vector<16x16xf32>
    %38 = arith.mulf %37, %36 : vector<16x16xf32>
    %39 = math.exp %38 : vector<16x16xf32>
    %cst_24 = arith.constant dense<0.000000e+00> : vector<16xf32>
    %40 = vector.multi_reduction <add>, %39, %cst_24 [0] : vector<16x16xf32> to vector<16xf32>
    %41 = vector.shape_cast %40 : vector<16xf32> to vector<1x16xf32>
    %c0_25 = arith.constant 0 : index
    %c0_26 = arith.constant 0 : index
    %c0_27 = arith.constant 0 : index
    %42 = vector.load %arg9[%c0_25, %c0_26, %c0_27] : memref<1x32x16xf32, #tpu.memory_space<vmem>>, vector<1x32x16xf32>
    %43 = vector.shape_cast %42 : vector<1x32x16xf32> to vector<32x16xf32>
    %44 = arith.subf %43, %1 : vector<32x16xf32>
    %45 = arith.mulf %44, %44 : vector<32x16xf32>
    %46 = vector.extract_strided_slice %45 {offsets = [0, 0], sizes = [16, 16], strides = [1, 1]} : vector<32x16xf32> to vector<16x16xf32>
    %47 = vector.extract_strided_slice %45 {offsets = [16, 0], sizes = [16, 16], strides = [1, 1]} : vector<32x16xf32> to vector<16x16xf32>
    %48 = arith.addf %46, %47 : vector<16x16xf32>
    %49 = math.sqrt %48 : vector<16x16xf32>
    %cst_28 = arith.constant 0.00999999977 : f32
    %50 = vector.broadcast %cst_28 : f32 to vector<16x16xf32>
    %51 = arith.addf %49, %50 : vector<16x16xf32>
    %52 = math.log %51 : vector<16x16xf32>
    %cst_29 = arith.constant 4.000000e-01 : f32
    %53 = vector.broadcast %cst_29 : f32 to vector<16x16xf32>
    %54 = arith.mulf %53, %52 : vector<16x16xf32>
    %55 = math.exp %54 : vector<16x16xf32>
    %cst_30 = arith.constant dense<0.000000e+00> : vector<16xf32>
    %56 = vector.multi_reduction <add>, %55, %cst_30 [0] : vector<16x16xf32> to vector<16xf32>
    %57 = vector.shape_cast %56 : vector<16xf32> to vector<1x16xf32>
    %58 = tpu.concatenate %21, %41, %57 in 0 : vector<1x16xf32>, vector<1x16xf32>, vector<1x16xf32> -> vector<3x16xf32>
    %c0_31 = arith.constant 0 : index
    %c0_32 = arith.constant 0 : index
    %c0_33 = arith.constant 0 : index
    %c0_34 = arith.constant 0 : index
    %59 = vector.load %arg10[%c0_31, %c0_32, %c0_33, %c0_34] : memref<1x1x3x16xf32, #tpu.memory_space<vmem>>, vector<1x1x3x16xf32>
    %60 = vector.shape_cast %59 : vector<1x1x3x16xf32> to vector<3x16xf32>
    %61 = vector.shape_cast %58 : vector<3x16xf32> to vector<1x1x3x16xf32>
    tpu.vector_store %arg10[%c0_31, %c0_32, %c0_33, %c0_34], %61 {strides = array<i32>} : memref<1x1x3x16xf32, #tpu.memory_space<vmem>>, vector<1x1x3x16xf32>,
    return
  }
  func.func @transform_0(%arg0: i32, %arg1: i32) -> (i32, i32, i32) {
    %c0_i32 = arith.constant 0 : i32
    %c0_i32_0 = arith.constant 0 : i32
    return %arg0, %c0_i32, %arg1 : i32, i32, i32
  }
  func.func @transform_1(%arg0: i32, %arg1: i32) -> (i32, i32, i32) {
    %c0_i32 = arith.constant 0 : i32
    %c0_i32_0 = arith.constant 0 : i32
    %c0_i32_1 = arith.constant 0 : i32
    return %arg0, %c0_i32, %c0_i32_0 : i32, i32, i32
  }
  func.func @transform_2(%arg0: i32, %arg1: i32) -> (i32, i32) {
    %c0_i32 = arith.constant 0 : i32
    %c0_i32_0 = arith.constant 0 : i32
    %c0_i32_1 = arith.constant 0 : i32
    return %c0_i32, %c0_i32_0 : i32, i32
  }
  func.func @transform_3(%arg0: i32, %arg1: i32) -> (i32, i32) {
    %c0_i32 = arith.constant 0 : i32
    %c0_i32_0 = arith.constant 0 : i32
    return %c0_i32, %arg1 : i32, i32
  }
  func.func @transform_4(%arg0: i32, %arg1: i32) -> (i32, i32, i32) {
    %c0_i32 = arith.constant 0 : i32
    %c0_i32_0 = arith.constant 0 : i32
    %c0_i32_1 = arith.constant 0 : i32
    return %arg0, %c0_i32, %c0_i32_0 : i32, i32, i32
  }
  func.func @transform_5(%arg0: i32, %arg1: i32) -> (i32, i32) {
    %c0_i32 = arith.constant 0 : i32
    %c0_i32_0 = arith.constant 0 : i32
    %c0_i32_1 = arith.constant 0 : i32
    return %c0_i32, %c0_i32_0 : i32, i32
  }
  func.func @transform_6(%arg0: i32, %arg1: i32) -> (i32, i32) {
    %c0_i32 = arith.constant 0 : i32
    %c0_i32_0 = arith.constant 0 : i32
    return %c0_i32, %arg1 : i32, i32
  }
  func.func @transform_7(%arg0: i32, %arg1: i32) -> (i32, i32, i32) {
    %c0_i32 = arith.constant 0 : i32
    %c0_i32_0 = arith.constant 0 : i32
    return %arg0, %c0_i32, %arg1 : i32, i32, i32
  }
  func.func @transform_8(%arg0: i32, %arg1: i32) -> (i32, i32, i32, i32) {
    %c0_i32 = arith.constant 0 : i32
    %c0_i32_0 = arith.constant 0 : i32
    %c0_i32_1 = arith.constant 0 : i32
    return %arg0, %arg1, %c0_i32, %c0_i32_0 : i32, i32, i32, i32
  }
}

</mosaic_0001>

<bundles_post_ra>
// kernel: tpu_custom_call.1
= control target key start
LH: loop header
LB: loop body
LE: loop exit
PB: predicated region body
PF: predicated region fallthrough
CT: control target
= control target key end

     0   :  { %s1369_s27 = smov 0   ;;  %s1371_s28 = smov 0   ;;  %s1465_s0 = inlined_call_operand.vmem [shape: f32[2,32,16], index: 0, kind: input, shape index: {}]   ;;  %s1466_s1 = inlined_call_operand.vmem [shape: f32[2,8,4], index: 1, kind: input, shape index: {}]   ;;  %s1467_s2 = inlined_call_operand.vmem [shape: f32[32,8], index: 2, kind: input, shape index: {}]   ;;  %s1468_s3 = inlined_call_operand.vmem [shape: f32[4,16], index: 3, kind: input, shape index: {}]   ;;  %s1469_s4 = inlined_call_operand.vmem [shape: f32[2,16,8], index: 4, kind: input, shape index: {}]   ;;  %s1470_s5 = inlined_call_operand.vmem [shape: f32[32,16], index: 5, kind: input, shape index: {}]   ;;  %s1471_s6 = inlined_call_operand.vmem [shape: f32[8,16], index: 6, kind: input, shape index: {}]   ;;  %s1472_s7 = inlined_call_operand.vmem [shape: f32[2,32,16], index: 7, kind: input, shape index: {}]   ;;  %s1473_s8 = inlined_call_operand.vmem [shape: f32[2,1,3,16], index: 8, kind: output, shape index: {}]  }
   0x1   :  { %s1373_s29 = smov 0  }
   0x2 LB: > { %s30_s30 = sadd.s32 1, %s1318_s28  ;;  %p1150_p0 = scmp.ge.s32.totalorder %s1322_s29, 1  ;;  %s1322_s29 = sphi %s1373_s29, %s18_s29   ;;  %s1318_s28 = sphi %s1371_s28, %s1475_s28   ;;  %s1314_s27 = sphi %s1369_s27, %s1474_s27  }
   0x3   : > { %p32_p1 = scmp.ge.s32.totalorder %s30_s30, 2  ;;  %p333_p2 = scmp.lt.s32.totalorder %s1322_s29, 3 }
   0x5   : > { %s1477_s30 = smov (%p32_p1, %s30_s30), 0  ;;  %p334_p3 = pnand %p1150_p0, %p333_p2 }
   0x6   : > { %p397_p4 = scmp.lt.s32.totalorder (!%p334_p3), %s1314_s27, 1  ;;  %v442_v0 = vld [vmem:[%s1467_s2] sm:$0xff] (!%p334_p3)  ;;  %vm447_vm0 = vcmask (!%p334_p3), 64512   ;;  %v443_v2 = vld [vmem:[%s1467_s2 + $0x8] sm:$0xff] (!%p334_p3)  ;;  %v444_v3 = vld [vmem:[%s1467_s2 + $0x10] sm:$0xff] (!%p334_p3)  ;;  %vm683_vm1 = vcmask (!%p334_p3), 130048  }
   0x7   : > { %337 = sbr.rel (%p334_p3) target bundleno = 528 (0x210), region = 52  ;;  %1204 = vmatprep.mubr.msk.f32.mxu0 (!%p334_p3), %vm447_vm0, %v442_v0  ;;  %v445_v7 = vld [vmem:[%s1467_s2 + $0x18] sm:$0xff] (!%p334_p3)  ;;  %v695_v8 = vld [vmem:[%s1470_s5] sm:$0xff] (!%p334_p3)  ;;  %v696_v9 = vld [vmem:[%s1470_s5 + $0x8] sm:$0xff] (!%p334_p3)  ;;  %vm558_vm2 = vcmask (!%p334_p3), 1043456   ;;  %vm545_vm3 = vcmask (!%p334_p3), 31744  }
   0x8   : > { %v697_v10 = vld [vmem:[%s1470_s5 + $0x10] sm:$0xff] (!%p334_p3)  ;;  %v698_v11 = vld [vmem:[%s1470_s5 + $0x18] sm:$0xff] (!%p334_p3)  ;;  %v446_v12 = vld [vmem:[%s1468_s3] sm:$0xf] (!%p334_p3) }
   0x9   : > { %1210 = vmatprep.subr.msk.mxu1 (!%p334_p3), %vm558_vm2, %v446_v12  ;;  %v699_v13 = vld [vmem:[%s1471_s6] sm:$0xff] (!%p334_p3) }
   0xa   : > { %1211 = vmatpush3.msk.msra.mxu1 (!%p334_p3), %vm558_vm2, %v446_v12  ;;  %vm990_vm2 = vcmask (!%p334_p3), 1041408  }
   0xb   : > { %1228 = vmatprep.subr.mxu1 (!%p334_p3), %v699_v13 }
   0xe   : > { %s1479_s27 = smov (!%p397_p4, %s1314_s27), 1 }
   0xf   : > { %s1153_s11 = sshll.u32 %s1479_s27, 3  ;;  %s1179_s17 = sshll.u32 %s1479_s27, 4 }
  0x10   : > { %s408_s14 = scalar_lea.vmem %s1466_s1, %s1153_s11  ;;  %s417_s20 = scalar_lea.vmem %s1469_s4, %s1179_s17 }
  0x11   : > { %v441_v1 = vld [vmem:[%s408_s14] sm:$0xff]  ;;  %v694_v5 = vld [vmem:[%s417_s20 + $0x8] sm:$0xff]  ;;  %s1178_s19 = sshll.u32 %s1479_s27, 5  ;;  %s1158_s26 = sshll.u32 %s1479_s27, 2 }
  0x12   : > { %1202 = vmatprep.subr.mxu0 %v441_v1  ;;  %v693_v4 = vld [vmem:[%s417_s20] sm:$0xff]  ;;  %s429_s22 = scalar_lea.vmem %s1472_s7, %s1178_s19  ;;  %s404_s25 = scalar_lea.vmem %s1465_s0, %s1178_s19 }
  0x13   : > { %1203 = vmatpush3.msra.mxu0 %v441_v1  ;;  %v1236_v6 = vpack.c.bf16 %v694_v5, %v693_v4  ;;  %v940_v22 = vld [vmem:[%s429_s22 + $0x8] sm:$0xff]  ;;  %v942_v23 = vld [vmem:[%s429_s22 + $0x18] sm:$0xff]  ;;  %v939_v24 = vld [vmem:[%s429_s22] sm:$0xff]  ;;  %s436_s11 = scalar_lea.vmem %s1473_s8, %s1158_s26 }
  0x14   : > { %1205 = vmatmul.mubr.msk.f32.vlgmr.msra.gmra.mrb[0].mxu0 %vm447_vm0, %v443_v2  ;;  %v941_v25 = vld [vmem:[%s429_s22 + $0x10] sm:$0xff]  ;;  %v438_v26 = vld [vmem:[%s404_s25 + $0x8] sm:$0xff]  ;;  %v440_v27 = vld [vmem:[%s404_s25 + $0x18] sm:$0xff] }
  0x15   : > { %1207 = vmatprep.mubr.msk.f32.mxu0 %vm447_vm0, %v444_v3  ;;  %1237 = vmatprep.subr.bf16.mxu0 %v1236_v6  ;;  %v944_v28 = vsub.f32 %v940_v22, %v438_v26  ;;  %v437_v29 = vld [vmem:[%s404_s25] sm:$0xff]  ;;  %v946_v30 = vsub.f32 %v942_v23, %v440_v27  ;;  %v439_v31 = vld [vmem:[%s404_s25 + $0x10] sm:$0xff] }
  0x16   : > { %1239 = vmatpush3.bf16.msra.mxu0 %v1236_v6  ;;  %v943_v32 = vsub.f32 %v939_v24, %v437_v29  ;;  %v945_v33 = vsub.f32 %v941_v25, %v439_v31 }
  0x17   : > { %v948_v34 = vmul.f32 %v944_v28, %v944_v28  ;;  %v950_v35 = vmul.f32 %v946_v30, %v946_v30 }
  0x18   : > { %1208 = vmatmul.mubr.msk.f32.gmra.mrb[2].mxu0 %vm447_vm0, %v445_v7  ;;  %v947_v36 = vmul.f32 %v943_v32, %v943_v32  ;;  %v949_v37 = vmul.f32 %v945_v33, %v945_v33 }
  0x19   : > { %1222 = vmatprep.mubr.msk.f32.mxu0 %vm683_vm1, %v695_v8  ;;  %v952_v38 = vadd.f32 %v950_v35, %v948_v34 }
  0x1a   : > { %v951_v39 = vadd.f32 %v949_v37, %v947_v36 }
  0x1b   : > { %1264 = vrsqrt.f32 %v952_v38  ;;  %vm962_vm4 = vcmp.eq.f32.partialorder %v952_v38, inf  ;;  %v965_v44 = vand.u32 2147483648, %v952_v38  ;;  %vm964_vm6 = vcmp.eq.f32.partialorder %v952_v38, 0.0 }
  0x1c   : > { %1223 = vmatmul.mubr.msk.f32.vlgmr.msra.gmra.mrb[4].mxu0 %vm683_vm1, %v696_v9  ;;  %1266 = vrsqrt.f32 %v951_v39  ;;  %vm955_vm5 = vcmp.eq.f32.partialorder %v951_v39, inf  ;;  %v958_v46 = vand.u32 2147483648, %v951_v39  ;;  %vm957_vm7 = vcmp.eq.f32.partialorder %v951_v39, 0.0 }
  0x1d   : > { %1225 = vmatprep.mubr.msk.f32.mxu0 %vm683_vm1, %v697_v10 }
  0x20   : > { %1226 = vmatmul.mubr.msk.f32.gmra.mrb[6].mxu0 %vm683_vm1, %v698_v11 }
  0x25   : > { %v1265_v40 = vpop.eup %1264 }
  0x26   : > { %v1267_v41 = vpop.eup %1266  ;;  %v961_v42 = vmul.f32 %v1265_v40, %v952_v38 }
  0x27   : > { %v954_v43 = vmul.f32 %v1267_v41, %v951_v39 }
  0x28   : > { %v963_v45 = vsel %vm962_vm4, %v952_v38, %v961_v42 }
  0x29   : > { %v956_v48 = vsel %vm955_vm5, %v951_v39, %v954_v43  ;;  %v966_v50 = vsel %vm964_vm6, %v965_v44, %v963_v45 }
  0x2a   : > { %v959_v52 = vsel %vm957_vm7, %v958_v46, %v956_v48  ;;  %v968_v56 = vadd.f32 0.01, %v966_v50 }
  0x2b   : > { %v967_v59 = vadd.f32 0.01, %v959_v52 }
  0x2c   : > { %1268 = vlog2.f32 %v968_v56 }
  0x2d   : > { %1270 = vlog2.f32 %v967_v59 }
  0xe7   : > { %v1206_v14 = vpop.f32.mrb[0].mxu0 }
  0xe8   : > { %v526_v15 = vpop.f32.mrb[1].mxu0 }
  0xe9   : > { %1212 = vmatprep.mubr.msk.f32.mxu1 %vm545_vm3, %v526_v15 }
  0xea   : > { %1213 = vmatmul.mubr.msk.f32.vlgmr.msra.gmra.mrb[0].mxu1 %vm545_vm3, %v1206_v14 }
  0xeb   : > { %v1209_v16 = vpop.f32.mrb[2].mxu0  ;;  %1229 = vmatpush3.msra.mxu1 %v699_v13 }
  0xec   : > { %v536_v17 = vpop.f32.mrb[3].mxu0 }
  0xed   : > { %1215 = vmatprep.mubr.msk.f32.mxu1 %vm545_vm3, %v536_v17 }
  0xee   : > { %1216 = vmatmul.mubr.msk.f32.gmra.mrb[2].mxu1 %vm545_vm3, %v1209_v16  ;;  %v1269_v16 = vpop.eup %1268 }
  0xef   : > { %v1224_v18 = vpop.f32.mrb[4].mxu0  ;;  %v1271_v17 = vpop.eup %1270 }
  0xf0   : > { %v778_v19 = vpop.f32.mrb[5].mxu0  ;;  %v970_v24 = vmul.f32 0.6931472, %v1271_v17 }
  0xf1   : > { %1230 = vmatprep.mubr.msk.f32.mxu1 %vm447_vm0, %v778_v19 }
  0xf2   : > { %1231 = vmatmul.mubr.msk.f32.vlgmr.msra.gmra.mrb[4].mxu1 %vm447_vm0, %v1224_v18  ;;  %v973_v33 = vmul.f32 0.4, %v970_v24 }
  0xf3   : > { %v1227_v20 = vpop.f32.mrb[6].mxu0 }
  0xf4   : > { %v788_v21 = vpop.f32.mrb[7].mxu0  ;;  %v975_v38 = vmul.f32 1.442695, %v973_v33 }
  0xf5   : > { %1233 = vmatprep.mubr.msk.f32.mxu1 %vm447_vm0, %v788_v21  ;;  %v972_v21 = vmul.f32 0.6931472, %v1269_v16 }
  0xf6   : > { %1234 = vmatmul.mubr.msk.f32.gmra.mrb[6].mxu1 %vm447_vm0, %v1227_v20  ;;  %vm988_vm0 = vcmask 1040384  }
  0xf7   : > { %v974_v30 = vmul.f32 0.4, %v972_v21 }
  0xf9   : > { %v977_v36 = vmul.f32 1.442695, %v974_v30 }
 0x1bd   : > { %v1214_v47 = vpop.f32.mrb[0].mxu1 }
 0x1be   : > { %v628_v49 = vpop.f32.mrb[1].mxu1  ;;  %v648_v51 = vsub.f32 %v1214_v47, %v438_v26 }
 0x1bf   : > { %v647_v53 = vsub.f32 %v628_v49, %v437_v29 }
 0x1c0   : > { %v652_v60 = vmul.f32 %v648_v51, %v648_v51 }
 0x1c1   : > { %v1217_v54 = vpop.f32.mrb[2].mxu1  ;;  %v651_v62 = vmul.f32 %v647_v53, %v647_v53 }
 0x1c2   : > { %v650_v55 = vsub.f32 %v1217_v54, %v440_v27  ;;  %v638_v57 = vpop.f32.mrb[3].mxu1 }
 0x1c3   : > { %v649_v58 = vsub.f32 %v638_v57, %v439_v31 }
 0x1c4   : > { %v654_v61 = vmul.f32 %v650_v55, %v650_v55 }
 0x1c5   : > { %v653_v63 = vmul.f32 %v649_v58, %v649_v58  ;;  %v1232_v0 = vpop.f32.mrb[4].mxu1 }
 0x1c6   : > { %v656_v1 = vadd.f32 %v654_v61, %v652_v60  ;;  %v875_v2 = vpop.f32.mrb[5].mxu1  ;;  %v895_v4 = vsub.f32 %v1232_v0, %v438_v26 }
 0x1c7   : > { %v655_v3 = vadd.f32 %v653_v63, %v651_v62  ;;  %v894_v5 = vsub.f32 %v875_v2, %v437_v29 }
 0x1c8   : > { %1272 = vrsqrt.f32 %v656_v1  ;;  %v899_v10 = vmul.f32 %v895_v4, %v895_v4  ;;  %vm666_vm8 = vcmp.eq.f32.partialorder %v656_v1, inf  ;;  %v669_v22 = vand.u32 2147483648, %v656_v1 }
 0x1c9   : > { %1274 = vrsqrt.f32 %v655_v3  ;;  %v1235_v6 = vpop.f32.mrb[6].mxu1  ;;  %v898_v12 = vmul.f32 %v894_v5, %v894_v5  ;;  %vm668_vm9 = vcmp.eq.f32.partialorder %v656_v1, 0.0  ;;  %vm659_vm10 = vcmp.eq.f32.partialorder %v655_v3, inf }
 0x1ca   : > { %v897_v7 = vsub.f32 %v1235_v6, %v440_v27  ;;  %v885_v8 = vpop.f32.mrb[7].mxu1  ;;  %v662_v26 = vand.u32 2147483648, %v655_v3  ;;  %vm661_vm11 = vcmp.eq.f32.partialorder %v655_v3, 0.0 }
 0x1cb   : > { %v896_v9 = vsub.f32 %v885_v8, %v439_v31 }
 0x1cc   : > { %v901_v11 = vmul.f32 %v897_v7, %v897_v7 }
 0x1cd   : > { %v900_v13 = vmul.f32 %v896_v9, %v896_v9 }
 0x1ce   : > { %v903_v14 = vadd.f32 %v901_v11, %v899_v10 }
 0x1cf   : > { %v902_v15 = vadd.f32 %v900_v13, %v898_v12 }
 0x1d0   : > { %1276 = vrsqrt.f32 %v903_v14  ;;  %vm913_vm12 = vcmp.eq.f32.partialorder %v903_v14, inf  ;;  %v916_v39 = vand.u32 2147483648, %v903_v14  ;;  %vm915_vm13 = vcmp.eq.f32.partialorder %v903_v14, 0.0 }
 0x1d1   : > { %1278 = vrsqrt.f32 %v902_v15  ;;  %vm906_vm14 = vcmp.eq.f32.partialorder %v902_v15, inf  ;;  %v909_v42 = vand.u32 2147483648, %v902_v15  ;;  %vm908_vm15 = vcmp.eq.f32.partialorder %v902_v15, 0.0 }
 0x1d2   : > { %v1273_v18 = vpop.eup %1272 }
 0x1d3   : > { %v1275_v19 = vpop.eup %1274  ;;  %v665_v20 = vmul.f32 %v1273_v18, %v656_v1 }
 0x1d4   : > { %v658_v23 = vmul.f32 %v1275_v19, %v655_v3 }
 0x1d5   : > { %v667_v25 = vsel %vm666_vm8, %v656_v1, %v665_v20 }
 0x1d6   : > { %v670_v27 = vsel %vm668_vm9, %v669_v22, %v667_v25  ;;  %v660_v28 = vsel %vm659_vm10, %v655_v3, %v658_v23 }
 0x1d7   : > { %v672_v29 = vadd.f32 0.01, %v670_v27  ;;  %v663_v31 = vsel %vm661_vm11, %v662_v26, %v660_v28 }
 0x1d8   : > { %v671_v32 = vadd.f32 0.01, %v663_v31 }
 0x1d9   : > { %1280 = vlog2.f32 %v672_v29 }
 0x1da   : > { %v1277_v34 = vpop.eup %1276  ;;  %1282 = vlog2.f32 %v671_v32 }
 0x1db   : > { %v1279_v35 = vpop.eup %1278  ;;  %v912_v37 = vmul.f32 %v1277_v34, %v903_v14  ;;  %1284 = vpow2.f32 %v977_v36 }
 0x1dc   : > { %v905_v40 = vmul.f32 %v1279_v35, %v902_v15  ;;  %1286 = vpow2.f32 %v975_v38 }
 0x1dd   : > { %v914_v41 = vsel %vm913_vm12, %v903_v14, %v912_v37 }
 0x1de   : > { %v917_v43 = vsel %vm915_vm13, %v916_v39, %v914_v41  ;;  %v907_v44 = vsel %vm906_vm14, %v902_v15, %v905_v40 }
 0x1df   : > { %v919_v45 = vadd.f32 0.01, %v917_v43  ;;  %v910_v46 = vsel %vm908_vm15, %v909_v42, %v907_v44 }
 0x1e0   : > { %v918_v47 = vadd.f32 0.01, %v910_v46 }
 0x1e1   : > { %1288 = vlog2.f32 %v919_v45 }
 0x1e2   : > { %1290 = vlog2.f32 %v918_v47 }
 0x1e3   : > { %v1281_v48 = vpop.eup %1280 }
 0x1e4   : > { %v1283_v49 = vpop.eup %1282  ;;  %v676_v50 = vmul.f32 0.6931472, %v1281_v48 }
 0x1e5   : > { %v674_v51 = vmul.f32 0.6931472, %v1283_v49  ;;  %v1285_v55 = vpop.eup %1284 }
 0x1e6   : > { %v678_v52 = vmul.f32 0.4, %v676_v50  ;;  %v1287_v57 = vpop.eup %1286  ;;  %v980_v63 = vsel %vm683_vm1, %v1285_v55, 0.0 }
 0x1e7   : > { %v677_v53 = vmul.f32 0.4, %v674_v51  ;;  %v979_v0 = vsel %vm683_vm1, %v1287_v57, 0.0 }
 0x1e8   : > { %v681_v54 = vmul.f32 1.442695, %v678_v52  ;;  %v981_v4 = vadd.f32 %v980_v63, %v979_v0 }
 0x1e9   : > { %v679_v56 = vmul.f32 1.442695, %v677_v53 }
 0x1ea   : > { %1292 = vpow2.f32 %v681_v54  ;;  %v982_v9 = vrot.slane %v981_v4, 4 }
 0x1eb   : > { %v1289_v58 = vpop.eup %1288  ;;  %1294 = vpow2.f32 %v679_v56 }
 0x1ec   : > { %v1291_v59 = vpop.eup %1290  ;;  %v923_v60 = vmul.f32 0.6931472, %v1289_v58  ;;  %v983_v12 = vadd.f32 %v982_v9, %v981_v4 }
 0x1ed   : > { %v921_v61 = vmul.f32 0.6931472, %v1291_v59 }
 0x1ee   : > { %v925_v62 = vmul.f32 0.4, %v923_v60  ;;  %v984_v17 = vrot.slane %v983_v12, 2 }
 0x1ef   : > { %v924_v1 = vmul.f32 0.4, %v921_v61 }
 0x1f0   : > { %v928_v2 = vmul.f32 1.442695, %v925_v62  ;;  %v985_v22 = vadd.f32 %v984_v17, %v983_v12 }
 0x1f1   : > { %v926_v3 = vmul.f32 1.442695, %v924_v1 }
 0x1f2   : > { %1296 = vpow2.f32 %v928_v2  ;;  %v986_v26 = vrot.slane %v985_v22, 1 }
 0x1f3   : > { %1298 = vpow2.f32 %v926_v3 }
 0x1f4   : > { %v1293_v5 = vpop.eup %1292  ;;  %v987_v30 = vadd.f32 %v986_v26, %v985_v22 }
 0x1f5   : > { %v1295_v6 = vpop.eup %1294  ;;  %v685_v7 = vsel %vm683_vm1, %v1293_v5, 0.0 }
 0x1f6   : > { %v684_v8 = vsel %vm683_vm1, %v1295_v6, 0.0 }
 0x1f7   : > { %v686_v10 = vadd.f32 %v685_v7, %v684_v8 }
 0x1f9   : > { %v687_v11 = vrot.slane %v686_v10, 4 }
 0x1fb   : > { %v688_v13 = vadd.f32 %v687_v11, %v686_v10 }
 0x1fc   : > { %v1297_v14 = vpop.eup %1296 }
 0x1fd   : > { %v1299_v15 = vpop.eup %1298  ;;  %v931_v16 = vsel %vm683_vm1, %v1297_v14, 0.0  ;;  %v689_v19 = vrot.slane %v688_v13, 2 }
 0x1fe   : > { %v930_v18 = vsel %vm683_vm1, %v1299_v15, 0.0  ;;  %vm992_vm1 = vcmask 124928  }
 0x1ff   : > { %v932_v20 = vadd.f32 %v931_v16, %v930_v18  ;;  %v690_v23 = vadd.f32 %v689_v19, %v688_v13 }
 0x201   : > { %v933_v21 = vrot.slane %v932_v20, 4  ;;  %v691_v27 = vrot.slane %v690_v23, 1 }
 0x203   : > { %v934_v24 = vadd.f32 %v933_v21, %v932_v20  ;;  %v692_v31 = vadd.f32 %v691_v27, %v690_v23 }
 0x205   : > { %v935_v25 = vrot.slane %v934_v24, 2 }
 0x207   : > { %v936_v28 = vadd.f32 %v935_v25, %v934_v24 }
 0x209   : > { %v937_v29 = vrot.slane %v936_v28, 1 }
 0x20b   : > { %v938_v32 = vadd.f32 %v937_v29, %v936_v28 }
 0x20d   : > { %v989_v33 = vsel %vm988_vm0, %v692_v31, %v938_v32 }
 0x20e   : > { %v991_v34 = vsel %vm990_vm2, %v989_v33, %v987_v30 }
 0x20f   : > { %993 = vst.msk [vmem:[%s436_s11] sm:$0x7] %vm992_vm1, %v991_v34 }
 0x210 PF: > { %s18_s29 = sadd.s32 1, %s1322_s29   ;;  %s1474_s27 = smov %s1318_s28 }
 0x211   : > { %p15_p5 = scmp.ge.s32.totalorder %s18_s29, 4   ;;  %s1475_s28 = smov %s1477_s30 }
 0x213   :  { %17 = sbr.rel (!%p15_p5) target bundleno = 2 (0x2), region = 97 }

</bundles_post_ra>
